<compile_context>
chip_gen: v7x
topology: tpu7x:2x2x1
jax: 0.10.0
libtpu: 0.0.40
codegen_flags: <defaults>
</compile_context>

<pallas_src>
import functools

import jax
import jax.numpy as jnp
from jax.experimental import pallas as pl
from jax.experimental.pallas import tpu as pltpu


# ----------------------------------------------------------------------------
# Glue: bilinear resize with align_corners=True (matches F.interpolate(...,
# mode='bilinear', align_corners=True)).  Pure JAX, used only when the spatial
# sizes of low/high features differ.
# ----------------------------------------------------------------------------
def bilinear_resize_align_corners(x, out_h, out_w):
    B, C, in_h, in_w = x.shape
    if (in_h, in_w) == (out_h, out_w):
        return x

    def coords(out_n, in_n):
        if out_n == 1:
            return jnp.zeros((1,), jnp.float32)
        return jnp.linspace(0.0, float(in_n - 1), out_n)

    ys = coords(out_h, in_h)
    xs = coords(out_w, in_w)
    y0 = jnp.clip(jnp.floor(ys).astype(jnp.int32), 0, in_h - 1)
    y1 = jnp.clip(y0 + 1, 0, in_h - 1)
    x0 = jnp.clip(jnp.floor(xs).astype(jnp.int32), 0, in_w - 1)
    x1 = jnp.clip(x0 + 1, 0, in_w - 1)
    wy = (ys - y0.astype(jnp.float32))[None, None, :, None]
    wx = (xs - x0.astype(jnp.float32))[None, None, None, :]

    g00 = x[:, :, y0][:, :, :, x0]
    g01 = x[:, :, y0][:, :, :, x1]
    g10 = x[:, :, y1][:, :, :, x0]
    g11 = x[:, :, y1][:, :, :, x1]
    top = g00 * (1.0 - wx) + g01 * wx
    bot = g10 * (1.0 - wx) + g11 * wx
    return top * (1.0 - wy) + bot * wy


# ----------------------------------------------------------------------------
# Hardware introspection (per-generation tuning).
# ----------------------------------------------------------------------------
def _tpu_generation():
    try:
        kind = jax.devices()[0].device_kind.lower()
    except Exception:
        return 5
    for g in (7, 6, 5, 4, 3, 2):
        if str(g) in kind:
            return g
    return 5


def _tpu_vmem_limit_bytes():
    cap = None
    try:
        info = pltpu.get_tpu_info()
        for name in ("vmem_capacity_bytes", "vmem_bytes", "vmem_size_bytes"):
            val = getattr(info, name, None)
            if val:
                cap = int(val)
                break
    except Exception:
        cap = None
    if cap is None:
        cap = 128 * 1024 * 1024
    # Leave headroom for compiler-internal scratch / semaphores:
    # v7x (64 MiB physical) -> ~44 MiB; v5e/v6e (128 MiB) -> 64 MiB.
    return max(32 * 1024 * 1024, min(64 * 1024 * 1024, cap - 20 * 1024 * 1024))


# ----------------------------------------------------------------------------
# Kernel 1: fused K/V projection, streamed to HBM in bf16 (K pre-transposed).
# grid = (B, num_kv_tiles); everything independent.
# ----------------------------------------------------------------------------
def _kv_proj_kernel(high_ref, wkv_ref, bkv_ref, kt_ref, v_ref, *, Cp):
    xh = high_ref[0]                                            # (tk, Cp) bf16
    kv = jnp.dot(xh, wkv_ref[...],
                 preferred_element_type=jnp.float32) + bkv_ref[...]
    k = kv[:, :Cp]                                              # (tk, Cp) f32
    v = kv[:, Cp:]
    kt_ref[0] = jnp.transpose(k).astype(kt_ref.dtype)           # (Cp, tk) bf16
    v_ref[0] = v.astype(v_ref.dtype)                            # (tk, Cp) bf16


# ----------------------------------------------------------------------------
# Kernel 2: flash attention + out-proj + residual + LayerNorm.
# grid = (B, num_q_tiles, num_kv_tiles), kv axis innermost (reduction).
# ----------------------------------------------------------------------------
def _cga_attn_kernel(low_ref, kt_ref, v_ref,
                     wq_ref, bq_ref, wo_ref, bo_ref, ln_g_ref, ln_b_ref,
                     out_ref,
                     q_s, m_s, l_s, acc_s,
                     *, C, Cp, N, tk, eps, exp_bf16):
    ki = pl.program_id(2)
    nk = pl.num_programs(2)

    # ---- Q projection (scale pre-folded) + online-softmax state init. ----
    @pl.when(ki == 0)
    def _():
        xl = low_ref[0]                                         # (tq, Cp) bf16
        q = jnp.dot(xl, wq_ref[...],
                    preferred_element_type=jnp.float32) + bq_ref[...]
        q_s[...] = q.astype(jnp.bfloat16)
        m_s[...] = jnp.full(m_s.shape, -jnp.inf, m_s.dtype)
        l_s[...] = jnp.zeros(l_s.shape, l_s.dtype)
        acc_s[...] = jnp.zeros(acc_s.shape, acc_s.dtype)

    # ---- online-softmax step against the streamed (pre-transposed) kv tile. ----
    kt = kt_ref[0]                                              # (Cp, tk) bf16
    v = v_ref[0]                                                # (tk, Cp) bf16
    s = jnp.dot(q_s[...], kt, preferred_element_type=jnp.float32)  # (tq, tk)

    if N % tk != 0:
        # N was padded up to a multiple of tk: mask padded keys to -inf.
        key_idx = ki * tk + jax.lax.broadcasted_iota(jnp.int32, s.shape, 1)
        s = jnp.where(key_idx < N, s, -jnp.inf)

    m_prev = m_s[...]
    m_new = jnp.maximum(m_prev, jnp.max(s, axis=-1, keepdims=True))
    alpha = jnp.exp(m_prev - m_new)
    if exp_bf16:
        # bf16 EUP (v6e/v7x): ~2x exp throughput; p goes straight to the MXU.
        p = jnp.exp((s - m_new).astype(jnp.bfloat16))
        l_s[...] = alpha * l_s[...] + jnp.sum(p.astype(jnp.float32),
                                              axis=-1, keepdims=True)
        pv = jnp.dot(p, v, preferred_element_type=jnp.float32)
    else:
        p = jnp.exp(s - m_new)
        l_s[...] = alpha * l_s[...] + jnp.sum(p, axis=-1, keepdims=True)
        pv = jnp.dot(p.astype(jnp.bfloat16), v,
                     preferred_element_type=jnp.float32)
    acc_s[...] = alpha * acc_s[...] + pv
    m_s[...] = m_new

    # ---- finalize: deferred normalization, out-proj, residual, LayerNorm,
    #      and in-kernel transpose to channels-first output. ----
    @pl.when(ki == nk - 1)
    def _():
        o = acc_s[...] * pl.reciprocal(l_s[...], approx=True)   # (tq, Cp) f32
        o = jnp.dot(o.astype(jnp.bfloat16), wo_ref[...],
                    preferred_element_type=jnp.float32) + bo_ref[...]
        y = low_ref[0].astype(jnp.float32) + o                  # residual
        # LayerNorm over the real C channels.  Padded lanes of y are exactly
        # zero, so sums over Cp equal sums over C; the centered term is masked
        # so the two-pass variance stays exact.
        mean = jnp.sum(y, axis=-1, keepdims=True) * (1.0 / C)
        centered = y - mean
        if Cp > C:
            lane = jax.lax.broadcasted_iota(jnp.int32, y.shape, 1)
            centered = jnp.where(lane < C, centered, 0.0)
        var = jnp.sum(centered * centered, axis=-1, keepdims=True) * (1.0 / C)
        yn = centered * jax.lax.rsqrt(var + eps)
        yn = yn * ln_g_ref[...] + ln_b_ref[...]
        out_ref[0] = jnp.transpose(yn).astype(out_ref.dtype)    # (Cp, tq)


# ----------------------------------------------------------------------------
# Wrapper.
# ----------------------------------------------------------------------------
def content_guided_attention(low_nchw, high_nchw, params, *, num_heads=8):
    """Forward pass matching PyTorch ContentGuidedAttention (eval mode,
    norm_first=False).  Inputs are NCHW; output is NCHW float32."""
    B, C, H, W = low_nchw.shape
    N = H * W
    scale = float((C // num_heads) ** (-0.5))
    Cp = max(128, ((C + 127) // 128) * 128)       # lane-dense padded channels

    gen = _tpu_generation()
    vmem_limit = _tpu_vmem_limit_bytes()
    tile = 256 if (gen >= 6 and N >= 256) else 128   # 2x256x256 MXU on v6e/v7x
    tq = tk = tile
    Np = ((N + tile - 1) // tile) * tile             # pad N up; keys masked
    nq = nk = Np // tile
    exp_bf16 = gen >= 6                              # no bf16 EUP on v5e

    # ---- glue: resize high features, flatten to channels-last bf16, pad. ----
    high_nchw = bilinear_resize_align_corners(high_nchw, H, W)

    def to_flat(x):
        x = jnp.transpose(x.reshape(B, C, N), (0, 2, 1)).astype(jnp.bfloat16)
        return jnp.pad(x, ((0, 0), (0, Np - N), (0, Cp - C)))

    low_flat = to_flat(low_nchw)                    # (B, Np, Cp) bf16
    high_flat = to_flat(high_nchw)                  # (B, Np, Cp) bf16

    # ---- host-side weight packing: pad, fold scale into Q, fuse K/V. ----
    def pad_w(w):
        return jnp.pad(w, ((0, Cp - C), (0, Cp - C)))

    def pad_b(b):
        return jnp.pad(b, ((0, 0), (0, Cp - C)))

    wq = (pad_w(params["wq_t"]) * scale).astype(jnp.bfloat16)
    bq = pad_b(params["bq"]) * scale
    wkv = jnp.concatenate([pad_w(params["wk_t"]), pad_w(params["wv_t"])],
                          axis=1).astype(jnp.bfloat16)          # (Cp, 2Cp)
    bkv = jnp.concatenate([pad_b(params["bk"]), pad_b(params["bv"])], axis=1)
    wo = pad_w(params["wo_t"]).astype(jnp.bfloat16)
    bo = pad_b(params["bo"])
    ln_g = pad_b(params["ln_g"])
    ln_b = pad_b(params["ln_b"])

    w_c2c = pl.BlockSpec((Cp, 2 * Cp), lambda *a: (0, 0))
    w_cc3 = pl.BlockSpec((Cp, Cp), lambda b, qi, ki: (0, 0))
    vec_2c = pl.BlockSpec((1, 2 * Cp), lambda *a: (0, 0))
    vec_c3 = pl.BlockSpec((1, Cp), lambda b, qi, ki: (0, 0))

    # ---- kernel 1: K/V projection streamed to HBM (bf16, K transposed). ----
    k_t, v_p = pl.pallas_call(
        functools.partial(_kv_proj_kernel, Cp=Cp),
        grid=(B, nk),
        in_specs=[pl.BlockSpec((1, tk, Cp), lambda b, i: (b, i, 0)),
                  w_c2c, vec_2c],
        out_specs=[pl.BlockSpec((1, Cp, tk), lambda b, i: (b, 0, i)),
                   pl.BlockSpec((1, tk, Cp), lambda b, i: (b, i, 0))],
        out_shape=(jax.ShapeDtypeStruct((B, Cp, Np), jnp.bfloat16),
                   jax.ShapeDtypeStruct((B, Np, Cp), jnp.bfloat16)),
        compiler_params=pltpu.CompilerParams(
            dimension_semantics=("parallel", "parallel"),
            vmem_limit_bytes=vmem_limit),
    )(high_flat, wkv, bkv)

    # ---- kernel 2: flash attention + out-proj + residual + LayerNorm. ----
    kernel = functools.partial(_cga_attn_kernel, C=C, Cp=Cp, N=N, tk=tk,
                               eps=1e-5, exp_bf16=exp_bf16)

    out_cn = pl.pallas_call(
        kernel,
        out_shape=jax.ShapeDtypeStruct((B, Cp, Np), jnp.float32),
        grid=(B, nq, nk),
        in_specs=[pl.BlockSpec((1, tq, Cp), lambda b, qi, ki: (b, qi, 0)),
                  pl.BlockSpec((1, Cp, tk), lambda b, qi, ki: (b, 0, ki)),
                  pl.BlockSpec((1, tk, Cp), lambda b, qi, ki: (b, ki, 0)),
                  w_cc3, vec_c3, w_cc3, vec_c3, vec_c3, vec_c3],
        out_specs=pl.BlockSpec((1, Cp, tq), lambda b, qi, ki: (b, 0, qi)),
        scratch_shapes=[
            pltpu.VMEM((tq, Cp), jnp.bfloat16),   # q tile (scale folded in)
            pltpu.VMEM((tq, 1), jnp.float32),     # m (running max)
            pltpu.VMEM((tq, 1), jnp.float32),     # l (running denom)
            pltpu.VMEM((tq, Cp), jnp.float32),    # acc
        ],
        # K/V are streamed, so batch AND q-tile axes are parallel (keeps both
        # v7x TensorCores busy even when B == 1); kv axis is the reduction.
        compiler_params=pltpu.CompilerParams(
            dimension_semantics=("parallel", "parallel", "arbitrary"),
            vmem_limit_bytes=vmem_limit),
    )(low_flat, k_t, v_p, wq, bq, wo, bo, ln_g, ln_b)

    # Output is already channels-first: just drop channel/spatial padding.
    return out_cn[:, :C, :N].reshape(B, C, H, W)


# ----------------------------------------------------------------------------
# Pure-JAX fp32 reference (matches the PyTorch forward, eval mode).
# ----------------------------------------------------------------------------
def reference_forward(low_nchw, high_nchw, params, *, num_heads=8):
    B, C, H, W = low_nchw.shape
    N = H * W
    scale = float((C // num_heads) ** (-0.5))
    high_nchw = bilinear_resize_align_corners(high_nchw, H, W)
    xl = jnp.transpose(low_nchw.reshape(B, C, N), (0, 2, 1))
    xh = jnp.transpose(high_nchw.reshape(B, C, N), (0, 2, 1))
    q = xl @ params["wq_t"] + params["bq"]
    k = xh @ params["wk_t"] + params["bk"]
    v = xh @ params["wv_t"] + params["bv"]
    attn = jnp.einsum("bnc,bmc->bnm", q, k) * scale
    attn = jax.nn.softmax(attn, axis=-1)
    o = jnp.einsum("bnm,bmc->bnc", attn, v)
    o = o @ params["wo_t"] + params["bo"]
    y = xl + o
    mean = y.mean(-1, keepdims=True)
    var = ((y - mean) ** 2).mean(-1, keepdims=True)
    yn = (y - mean) * jax.lax.rsqrt(var + 1e-5)
    yn = yn * params["ln_g"] + params["ln_b"]
    return jnp.transpose(yn, (0, 2, 1)).reshape(B, C, H, W)


def init_params(key, channels):
    ks = jax.random.split(key, 9)
    C = channels

    def conv_w(k):  # stored pre-transposed: (Cin, Cout)
        return jax.random.normal(k, (C, C), jnp.float32) * 0.1

    def bias(k):
        return jax.random.normal(k, (1, C), jnp.float32) * 0.05

    return {
        "wq_t": conv_w(ks[0]), "bq": bias(ks[1]),
        "wk_t": conv_w(ks[2]), "bk": bias(ks[3]),
        "wv_t": conv_w(ks[4]), "bv": bias(ks[5]),
        "wo_t": conv_w(ks[6]), "bo": bias(ks[7]),
        "ln_g": jnp.ones((1, C), jnp.float32)
                + 0.1 * jax.random.normal(ks[8], (1, C), jnp.float32),
        "ln_b": jnp.zeros((1, C), jnp.float32) + 0.01,
    }


if __name__ == "__main__":
    key = jax.random.PRNGKey(0)
    k_low, k_high, k_par = jax.random.split(key, 3)

    B, C, H, W = 2, 32, 16, 16        # low features (NCHW), N = 256
    Hh, Wh = 8, 8                     # high features at coarser resolution
    num_heads = 8

    low = jax.random.normal(k_low, (B, C, H, W), jnp.float32)
    high = jax.random.normal(k_high, (B, C, Hh, Wh), jnp.float32)
    params = init_params(k_par, C)

    out = content_guided_attention(low, high, params, num_heads=num_heads)
    out = jax.block_until_ready(out)

    ref = reference_forward(low, high, params, num_heads=num_heads)
    assert out.shape == (B, C, H, W)
    max_err = float(jnp.max(jnp.abs(out - ref)))
    # bf16 operands/inputs + bf16 exp + approx reciprocal vs fp32 reference.
    assert max_err < 5e-2, f"mismatch vs reference: max abs err {max_err}"

    print("KERNEL_OK")
</pallas_src>

<mosaic_0001>
module attributes {stable_mosaic.version = 11 : i64} {
  func.func @_kv_proj_kernel(%arg0: i32, %arg1: i32, %arg2: memref<1x128x128xbf16, #tpu.memory_space<vmem>>, %arg3: memref<128x256xbf16, #tpu.memory_space<vmem>>, %arg4: memref<1x256xf32, #tpu.memory_space<vmem>>, %arg5: memref<1x128x128xbf16, #tpu.memory_space<vmem>>, %arg6: memref<1x128x128xbf16, #tpu.memory_space<vmem>>) attributes {dimension_semantics = [#tpu.dimension_semantics<parallel>, #tpu.dimension_semantics<parallel>], iteration_bounds = array<i64: 2, 2>, scalar_prefetch = 0 : i64, scratch_operands = 0 : i64, tpu.core_type = #tpu.core_type<tc>, window_params = [{transform_indices = @transform_0, window_bounds = array<i64: 1, 128, 128>}, {pipeline_mode = #tpu.pipeline_mode<synchronous>, transform_indices = @transform_1, window_bounds = array<i64: 128, 256>}, {pipeline_mode = #tpu.pipeline_mode<synchronous>, transform_indices = @transform_2, window_bounds = array<i64: 1, 256>}, {transform_indices = @transform_3, window_bounds = array<i64: 1, 128, 128>}, {transform_indices = @transform_4, window_bounds = array<i64: 1, 128, 128>}]} {
    %c0 = arith.constant 0 : index
    %c0_0 = arith.constant 0 : index
    %c0_1 = arith.constant 0 : index
    %0 = vector.load %arg2[%c0, %c0_0, %c0_1] : memref<1x128x128xbf16, #tpu.memory_space<vmem>>, vector<1x128x128xbf16>
    %1 = vector.shape_cast %0 : vector<1x128x128xbf16> to vector<128x128xbf16>
    %c0_2 = arith.constant 0 : index
    %c0_3 = arith.constant 0 : index
    %2 = vector.load %arg3[%c0_2, %c0_3] : memref<128x256xbf16, #tpu.memory_space<vmem>>, vector<128x256xbf16>
    %cst = arith.constant dense<0.000000e+00> : vector<128x256xf32>
    %3 = tpu.matmul %1, %2, %cst {dimension_numbers = #tpu.dot_dimension_numbers<[1], [0], [0], [1], [0, 0, 1, 1], [], []>} : vector<128x128xbf16>, vector<128x256xbf16>, vector<128x256xf32> -> vector<128x256xf32>
    %c0_4 = arith.constant 0 : index
    %c0_5 = arith.constant 0 : index
    %4 = vector.load %arg4[%c0_4, %c0_5] : memref<1x256xf32, #tpu.memory_space<vmem>>, vector<1x256xf32>
    %5 = vector.broadcast %4 : vector<1x256xf32> to vector<128x256xf32>
    %6 = arith.addf %3, %5 : vector<128x256xf32>
    %7 = vector.extract_strided_slice %6 {offsets = [0, 0], sizes = [128, 128], strides = [1, 1]} : vector<128x256xf32> to vector<128x128xf32>
    %8 = vector.extract_strided_slice %6 {offsets = [0, 128], sizes = [128, 128], strides = [1, 1]} : vector<128x256xf32> to vector<128x128xf32>
    %9 = tpu.transpose %7, [1, 0] : vector<128x128xf32> -> vector<128x128xf32>
    %10 = arith.truncf %9 : vector<128x128xf32> to vector<128x128xbf16>
    %c0_6 = arith.constant 0 : index
    %c0_7 = arith.constant 0 : index
    %c0_8 = arith.constant 0 : index
    %11 = vector.load %arg5[%c0_6, %c0_7, %c0_8] : memref<1x128x128xbf16, #tpu.memory_space<vmem>>, vector<1x128x128xbf16>
    %12 = vector.shape_cast %11 : vector<1x128x128xbf16> to vector<128x128xbf16>
    %13 = vector.shape_cast %10 : vector<128x128xbf16> to vector<1x128x128xbf16>
    tpu.vector_store %arg5[%c0_6, %c0_7, %c0_8], %13 {strides = array<i32>} : memref<1x128x128xbf16, #tpu.memory_space<vmem>>, vector<1x128x128xbf16>,
    %14 = arith.truncf %8 : vector<128x128xf32> to vector<128x128xbf16>
    %c0_9 = arith.constant 0 : index
    %c0_10 = arith.constant 0 : index
    %c0_11 = arith.constant 0 : index
    %15 = vector.load %arg6[%c0_9, %c0_10, %c0_11] : memref<1x128x128xbf16, #tpu.memory_space<vmem>>, vector<1x128x128xbf16>
    %16 = vector.shape_cast %15 : vector<1x128x128xbf16> to vector<128x128xbf16>
    %17 = vector.shape_cast %14 : vector<128x128xbf16> to vector<1x128x128xbf16>
    tpu.vector_store %arg6[%c0_9, %c0_10, %c0_11], %17 {strides = array<i32>} : memref<1x128x128xbf16, #tpu.memory_space<vmem>>, vector<1x128x128xbf16>,
    return
  }
  func.func @transform_0(%arg0: i32, %arg1: i32) -> (i32, i32, i32) {
    %c0_i32 = arith.constant 0 : i32
    %c0_i32_0 = arith.constant 0 : i32
    return %arg0, %arg1, %c0_i32 : i32, i32, i32
  }
  func.func @transform_1(%arg0: i32, %arg1: i32) -> (i32, i32) {
    %c0_i32 = arith.constant 0 : i32
    %c0_i32_0 = arith.constant 0 : i32
    %c0_i32_1 = arith.constant 0 : i32
    return %c0_i32, %c0_i32_0 : i32, i32
  }
  func.func @transform_2(%arg0: i32, %arg1: i32) -> (i32, i32) {
    %c0_i32 = arith.constant 0 : i32
    %c0_i32_0 = arith.constant 0 : i32
    %c0_i32_1 = arith.constant 0 : i32
    return %c0_i32, %c0_i32_0 : i32, i32
  }
  func.func @transform_3(%arg0: i32, %arg1: i32) -> (i32, i32, i32) {
    %c0_i32 = arith.constant 0 : i32
    %c0_i32_0 = arith.constant 0 : i32
    return %arg0, %c0_i32, %arg1 : i32, i32, i32
  }
  func.func @transform_4(%arg0: i32, %arg1: i32) -> (i32, i32, i32) {
    %c0_i32 = arith.constant 0 : i32
    %c0_i32_0 = arith.constant 0 : i32
    return %arg0, %arg1, %c0_i32 : i32, i32, i32
  }
}

</mosaic_0001>

<bundles_post_ra>
// kernel: tpu_custom_call.1
= control target key start
LH: loop header
LB: loop body
LE: loop exit
PB: predicated region body
PF: predicated region fallthrough
CT: control target
= control target key end

     0   :  { %s1966_s0 = inlined_call_operand.hbm [shape: bf16[2,256,128], index: 0, kind: input, shape index: {}]   ;;  %s1967_s1 = inlined_call_operand.hbm [shape: bf16[128,256], index: 1, kind: input, shape index: {}]   ;;  %s1968_s2 = inlined_call_operand.hbm [shape: f32[1,256], index: 2, kind: input, shape index: {}]   ;;  %s1969_s3 = inlined_call_operand.hbm [shape: bf16[2,128,256], index: 3, kind: output, shape index: {0}]   ;;  %s1970_s4 = inlined_call_operand.hbm [shape: bf16[2,256,128], index: 4, kind: output, shape index: {1}]  }
   0x1   :  { %1979 = sst [smem:[#allocation18_spill]] %s1967_s1 }
   0x2   :  { %1980 = sst [smem:[#allocation19_spill]] %s1968_s2 }
   0x3   :  { %1981 = sst [smem:[#allocation20_spill]] %s1969_s3 }
   0x4   :  { %10 = vsyncpa [#allocation3], 0 }
   0x5   :  { %12 = vsyncpa [#allocation3 + $0x1], 0 }
   0x6   :  { %13 = vsyncpa [#allocation6], 0 }
   0x7   :  { %14 = vsyncpa [#allocation4], 0 }
   0x8   :  { %16 = vsyncpa [#allocation4 + $0x1], 0 }
   0x9   :  { %17 = vsyncpa [#allocation10], 0 }
   0xa   :  { %19 = vsyncpa [#allocation10 + $0x1], 0  ;;  %s1562_s15 = smov 0   ;;  %s1564_s16 = smov 0  }
   0xb   :  { %s1566_s17 = smov 0   ;;  %s1568_s18 = smov 0  }
   0xc   :  { %s1570_s19 = smov 0   ;;  %s1572_s20 = smov 0  }
   0xd   :  { %s1574_s21 = smov 0   ;;  %s1576_s22 = smov 0  }
   0xe LB: > { %1982 = sst [smem:[#allocation15_spill]] %s1494_s15  ;;  %s935_s23 = sadd.s32 4294967295, %s1522_s22   ;;  %s1522_s22 = sphi %s1576_s22, %s25_s22   ;;  %s1518_s21 = sphi %s1574_s21, %s2011_s21   ;;  %s1514_s20 = sphi %s1572_s20, %s2010_s20   ;;  %s1510_s19 = sphi %s1570_s19, %s2009_s19   ;;  %s1506_s18 = sphi %s1568_s18, %s2008_s18   ;;  %s1502_s17 = sphi %s1566_s17, %s2007_s17   ;;  %s1498_s16 = sphi %s1564_s16, %s2006_s16   ;;  %s1494_s15 = sphi %s1562_s15, %s2005_s15  }
   0xf   : > { %s936_s24 = sadd.s32 4294967294, %s1522_s22   ;;  %p59_p0 = scmp.ne.s32.totalorder %s1498_s16, %s1494_s15 }
  0x10   : > { %p1606_p1 = scmp.eq.s32.totalorder %s935_s23, 0  ;;  %p1610_p2 = scmp.eq.s32.totalorder %s935_s23, 3 }
  0x11   : > { %p133_p3 = scmp.eq.s32.totalorder %s936_s24, 3  ;;  %p937_p5 = scmp.ge.s32.totalorder %s1522_s22, 1 }
  0x12   : > { %s1983_s25 = scalar_select %p1606_p1, 1, 0 }
  0x13   : > { %s1984_s26 = scalar_select %p1610_p2, 1, 0 }
  0x14   : > { %p1616_p4 = por %p1606_p1, %p59_p0  ;;  %p1621_p6 = por %p133_p3, %p59_p0 }
  0x15   : > { %p168_p7 = scmp.lt.s32.totalorder %s1522_s22, 5  ;;  %s1524_s30 = smov [#allocation5]  }
  0x16   : > { %s1985_s27 = scalar_select %p1616_p4, 1, 0 }
  0x17   : > { %s1986_s28 = scalar_select %p1621_p6, 1, 0 }
  0x18   : > { %p1626_p8 = pnand %p937_p5, %p168_p7  ;;  %s180_s5 = sshll.u32 %s1524_s30, 4  ;;  %s181_s5 = int_to_ptr.vmem [resolvable:$true] %s180_s5 }
  0x19   : > { %1987 = sst [smem:[#allocation16_spill]] %s1986_s28  ;;  %s1525_s7 = smov [#allocation7]  }
  0x1a   : > { %s1988_s29 = scalar_select %p1626_p8, 1, 0 }
  0x1b   : > { %p1172_p9 = pneg %p1626_p8  ;;  %s194_s8 = sshll.u32 %s1525_s7, 4  ;;  %s1638_s8 = int_to_ptr.vmem [resolvable:$true] %s194_s8 }
  0x1c   : > { %s1990_s1 = sld [smem:[#allocation18_spill]] }
  0x1d   : > { %p1634_p10 = pnand %p1172_p9, %p1606_p1 }
  0x1f   : > { %p1304_p12 = pneg %p1634_p10 }
  0x22   : > { %s1302_s11 = scalar_lea.hbm %s1990_s1, 2048 }
  0x23   : > { %p1303_p11 = scmp.ne.s32.totalorder %s1990_s1, %s1302_s11  ;;  %p1309_p3 = scmp.lt.u32.totalorder %s1302_s11, %s1990_s1 }
  0x25   : > { %p1305_p13 = pnand %p1304_p12, %p1303_p11 }
  0x27   : > { %p1306_p0 = pneg %p1305_p13 }
  0x29   : > { %p1311_p5 = pnand %p1309_p3, %p1306_p0 }
  0x2b   : > { %1314 = shalt.err (!%p1311_p5)
}
  0x2c   : > { %s1315_s24 = scalar_lea.vmem %s181_s5, 2048  ;;  %p1323_p1 = scmp.lt.s32.totalorder %s181_s5, %s181_s5 }
  0x2d   : > { %p1316_p7 = scmp.ne.s32.totalorder %s181_s5, %s1315_s24  ;;  %p1324_p4 = scmp.lt.s32.totalorder %s1315_s24, %s1315_s24 }
  0x2f   : > { %p1318_p9 = pnand %p1316_p7, %p1304_p12  ;;  %p1325_p8 = por %p1324_p4, %p1323_p1 }
  0x31   : > { %p1319_p6 = pneg %p1318_p9 }
  0x33   : > { %p1326_p2 = pnand %p1325_p8, %p1319_p6 }
  0x35   : > { %1329 = shalt.err (!%p1326_p2)
}
  0x36   : > { %s1526_s30 = smov 128   ;;  %s1527_s7 = smov 8  }
  0x37   : > { %1175 = dma.hbm_to_vmem [thread:$0]  (!%p1634_p10), %s1990_s1, 2048, %s181_s5, [#allocation6], %s1526_s30, %s1526_s30, %s1527_s7  }
  0x38   : > { %s1991_s2 = sld [smem:[#allocation19_spill]] }
  0x3e   : > { %s1330_s13 = scalar_lea.hbm %s1991_s2, 32 }
  0x3f   : > { %p1331_p11 = scmp.ne.s32.totalorder %s1991_s2, %s1330_s13  ;;  %p1337_p4 = scmp.lt.u32.totalorder %s1330_s13, %s1991_s2 }
  0x41   : > { %p1333_p1 = pnand %p1331_p11, %p1304_p12 }
  0x43   : > { %p1334_p2 = pneg %p1333_p1 }
  0x45   : > { %p1339_p6 = pnand %p1337_p4, %p1334_p2 }
  0x47   : > { %1342 = shalt.err (!%p1339_p6)
}
  0x48   : > { %s1343_s5 = scalar_lea.vmem %s1638_s8, 32  ;;  %p1351_p3 = scmp.lt.s32.totalorder %s1638_s8, %s1638_s8 }
  0x49   : > { %p1344_p8 = scmp.ne.s32.totalorder %s1638_s8, %s1343_s5  ;;  %p1352_p5 = scmp.lt.s32.totalorder %s1343_s5, %s1343_s5 }
  0x4b   : > { %p1346_p13 = pnand %p1344_p8, %p1304_p12  ;;  %p1353_p7 = por %p1352_p5, %p1351_p3 }
  0x4d   : > { %p1347_p0 = pneg %p1346_p13 }
  0x4f   : > { %p1354_p9 = pnand %p1353_p7, %p1347_p0 }
  0x51   : > { %1357 = shalt.err (!%p1354_p9)
}
  0x52   : > { %1178 = dma.hbm_to_vmem [thread:$0]  (!%p1634_p10), %s1991_s2, 32, %s1638_s8, [#allocation6]  }
  0x53   : > { %s34_s7 = sadd.s32 1, %s1514_s20  ;;  %s37_s9 = sadd.s32 1, %s1518_s21 }
  0x54   : > { %p35_p12 = scmp.ge.s32.totalorder %s34_s7, 2  ;;  %s46_s6 = sadd.s32 1, %s1502_s17 }
  0x55   : > { %p53_p11 = scmp.ne.s32.totalorder %s1502_s17, %s1498_s16  ;;  %p54_p1 = scmp.eq.s32.totalorder %s1522_s22, 0 }
  0x56   : > { %s2013_s7 = smov (%p35_p12, %s34_s7), 0  ;;  %s2015_s9 = smov (!%p35_p12, %s37_s9), %s1518_s21 }
  0x57   : > { %1992 = sst [smem:[#allocation17_spill]] %s2013_s7  ;;  %s42_s10 = ssub.s32 %s1514_s20, %s2013_s7 }
  0x58   : > { %p1698_p2 = por %p54_p1, %p53_p11  ;;  %p39_p10 = scmp.ge.s32.totalorder %s2015_s9, 2 }
  0x59   : > { %p1994_p4 = scmp.ne.s32.totalorder %s1984_s26, 0  ;;  %p1192_p8 = scmp.lt.s32.totalorder %s1522_s22, 4 }
  0x5a   : > { %s205_s12 = sand.u32 1, %s1502_s17   ;;  %s2017_s9 = smov (%p39_p10, %s2015_s9), 0 }
  0x5b   : > { %p1704_p6 = por %p1994_p4, %p53_p11  ;;  %s941_s13 = sshll.u32 %s205_s12, 6 }
  0x5c   : > { %s41_s14 = ssub.s32 %s1518_s21, %s2017_s9  ;;  %s942_s24 = sshll.u32 %s1514_s20, 4 }
  0x5d   : > { %s43_s23 = sor.u32 %s42_s10, %s41_s14  ;;  %s943_s5 = sshll.u32 %s1518_s21, 5 }
  0x5e   : > { %p44_p13 = scmp.eq.s32.totalorder %s43_s23, 0  ;;  %s215_s28 = sadd.s32 %s943_s5, %s942_s24 }
  0x5f   : > { %s209_s30 = scalar_lea.vmem [#allocation2], %s941_s13  ;;  %s944_s2 = sshll.u32 %s215_s28, 6 }
  0x60   : > { %s218_s26 = sshll.u32 %s209_s30, 4  ;;  %s1724_s3 = scalar_lea.hbm %s1966_s0, %s944_s2  ;;  %s1719_s26 = int_to_ptr.vmem [resolvable:$true] %s218_s26 }
  0x61   : > { %s1717_s1 = scalar_select %p44_p13, %s1502_s17, %s46_s6  }
  0x62   : > { %p1730_p0 = pnand %p1192_p8, %p1698_p2  ;;  %s1734_s6 = scalar_lea.sflag [#allocation3], %s205_s12 }
  0x63   : > { %s1358_s13 = scalar_lea.hbm %s1724_s3, 1024  ;;  %s1363_s7 = scalar_lea.hbm %s1966_s0, 4096 }
  0x64   : > { %p1359_p3 = scmp.ne.s32.totalorder %s1724_s3, %s1358_s13  ;;  %p1360_p5 = pneg %p1730_p0 }
  0x65   : > { %p1364_p12 = scmp.lt.u32.totalorder %s1724_s3, %s1966_s0  ;;  %p1365_p11 = scmp.lt.u32.totalorder %s1363_s7, %s1358_s13 }
  0x66   : > { %p1361_p7 = pnand %p1360_p5, %p1359_p3  ;;  %p1367_p2 = scmp.lt.u32.totalorder %s1358_s13, %s1724_s3 }
  0x67   : > { %p1366_p1 = por %p1365_p11, %p1364_p12 }
  0x68   : > { %p1362_p9 = pneg %p1361_p7 }
  0x69   : > { %p1368_p10 = por %p1367_p2, %p1366_p1 }
  0x6b   : > { %p1369_p4 = pnand %p1368_p10, %p1362_p9 }
  0x6d   : > { %1372 = shalt.err (!%p1369_p4)
}
  0x6e   : > { %s1373_s12 = scalar_lea.vmem %s1719_s26, 1024  ;;  %s1528_s23 = smov [#allocation2]  }
  0x6f   : > { %p1374_p8 = scmp.ne.s32.totalorder %s1719_s26, %s1373_s12  ;;  %s1378_s24 = sshll.u32 %s1528_s23, 4  ;;  %s1379_s24 = int_to_ptr.vmem [resolvable:$false] %s1378_s24 }
  0x70   : > { %s1380_s5 = scalar_lea.vmem %s1379_s24, 2048  ;;  %p1381_p7 = scmp.lt.s32.totalorder %s1719_s26, %s1379_s24 }
  0x71   : > { %p1376_p13 = pnand %p1374_p8, %p1360_p5  ;;  %p1382_p12 = scmp.lt.s32.totalorder %s1380_s5, %s1373_s12 }
  0x73   : > { %p1377_p3 = pneg %p1376_p13  ;;  %p1383_p11 = por %p1382_p12, %p1381_p7 }
  0x75   : > { %p1384_p1 = pnand %p1383_p11, %p1377_p3 }
  0x77   : > { %1387 = shalt.err (!%p1384_p1)
}
  0x78   : > { %s1529_s28 = smov 64   ;;  %s1530_s30 = smov 4  }
  0x79   : > { %1182 = dma.hbm_to_vmem [thread:$0]  (!%p1730_p0), %s1724_s3, 1024, %s1719_s26, %s1734_s6, %s1529_s28, %s1529_s28, %s1530_s30  }
  0x7a   : > { %p1997_p5 = scmp.ne.s32.totalorder %s1988_s29, 0 }
  0x7b   : > { %s1765_s13 = sand.u32 (!%p1997_p5), 1, %s1498_s16   ;;  %p1998_p9 = scmp.ne.s32.totalorder (!%p1997_p5), %s1985_s27, 0 }
  0x7c   : > { %230 = sbr.rel (%p1997_p5) target bundleno = 589 (0x24d), region = 32  ;;  %s1768_s2 = sshll.u32 (!%p1997_p5), %s1765_s13, 6 }
  0x7d   : > { %s233_s15 = scalar_lea.sflag (!%p1997_p5), [#allocation3], %s1765_s13  ;;  %s1772_s7 = scalar_lea.vmem (!%p1997_p5), [#allocation2], %s1768_s2 }
  0x83   : > { %1477 = dma.done.wait (%p1998_p9), %s233_s15, 1024  }
  0x84   : > { %1479 = vsyncadd (%p1998_p9), %s233_s15, 4294966272  ;;  %p1999_p0 = scmp.ne.s32.totalorder %s1983_s25, 0 }
  0x86   : > { %1481 = dma.done.wait (%p1999_p0), [#allocation6], 2080  }
  0x87   : > { %1483 = vsyncadd (%p1999_p0), [#allocation6], 4294965216  ;;  %v1531_v0 = vmov 0   ;;  %v1270_v1 = vld [vmem:[#allocation5 + $0x4] ss:$8 sps:$4 sm:$0xff]   ;;  %v1296_v21 = vld [vmem:[%s1772_s7 + $0x10] sm:$0xff]   ;;  %v311_v25 = vlaneseq }
  0x88   : > { %481 = vmatprep.mubr.bf16.mxu0 %v1531_v0  ;;  %521 = vmatprep.mubr.bf16.mxu1 %v1531_v0  ;;  %v1272_v2 = vld [vmem:[#allocation5] ss:$8 sps:$4 sm:$0xff]   ;;  %v1273_v3 = vld [vmem:[#allocation5 + $0x14] ss:$8 sps:$4 sm:$0xff]   ;;  %v1275_v4 = vld [vmem:[#allocation5 + $0x10] ss:$8 sps:$4 sm:$0xff]  }
  0x89   : > { %449 = vmatprep.subr.bf16.mxu0 %v1270_v1  ;;  %1142 = vmatprep.subr.bf16.mxu1 %v1270_v1  ;;  %v1276_v5 = vld [vmem:[#allocation5 + $0x24] ss:$8 sps:$4 sm:$0xff]   ;;  %v1278_v6 = vld [vmem:[#allocation5 + $0x20] ss:$8 sps:$4 sm:$0xff]   ;;  %v1279_v7 = vld [vmem:[#allocation5 + $0x34] ss:$8 sps:$4 sm:$0xff]  }
  0x8a   : > { %450 = vmatpush1.bf16.msra.mxu0 %v1272_v2  ;;  %1150 = vmatpush1.bf16.msra.mxu1 %v1272_v2  ;;  %v1281_v8 = vld [vmem:[#allocation5 + $0x30] ss:$8 sps:$4 sm:$0xff]   ;;  %v1282_v9 = vld [vmem:[#allocation5 + $0x44] ss:$8 sps:$4 sm:$0xff]   ;;  %v1284_v10 = vld [vmem:[#allocation5 + $0x40] ss:$8 sps:$4 sm:$0xff]  }
  0x8b   : > { %451 = vmatprep.subr.bf16.mxu0 %v1273_v3  ;;  %1143 = vmatprep.subr.bf16.mxu1 %v1273_v3  ;;  %v1285_v11 = vld [vmem:[#allocation5 + $0x54] ss:$8 sps:$4 sm:$0xff]   ;;  %v1287_v12 = vld [vmem:[#allocation5 + $0x50] ss:$8 sps:$4 sm:$0xff]   ;;  %v1288_v13 = vld [vmem:[#allocation5 + $0x64] ss:$8 sps:$4 sm:$0xff]  }
  0x8c   : > { %v1290_v14 = vld [vmem:[#allocation5 + $0x60] ss:$8 sps:$4 sm:$0xff]   ;;  %v1291_v15 = vld [vmem:[#allocation5 + $0x74] ss:$8 sps:$4 sm:$0xff]   ;;  %v1293_v16 = vld [vmem:[#allocation5 + $0x70] ss:$8 sps:$4 sm:$0xff]  }
  0x8d   : > { %v1294_v17 = vld [vmem:[%s1772_s7] sm:$0xff]   ;;  %v1295_v19 = vld [vmem:[%s1772_s7 + $0x8] sm:$0xff]   ;;  %v1300_v22 = vld [vmem:[%s1772_s7 + $0x30] sm:$0xff]   ;;  %v312_v26 = vshrl.u32 %v311_v25, 7  ;;  %s1813_s3 = scalar_lea.vmem [#allocation9], %s1768_s2  ;;  %s1009_s25 = sshll.u32 %s1510_s19, 5 }
  0x8e   : > { %452 = vmatpush1.bf16.msra.mxu0 %v1275_v4  ;;  %1151 = vmatpush1.bf16.msra.mxu1 %v1275_v4  ;;  %v1298_v18 = vld [vmem:[%s1772_s7 + $0x20] sm:$0xff]   ;;  %v1299_v20 = vld [vmem:[%s1772_s7 + $0x28] sm:$0xff]   ;;  %v1297_v23 = vld [vmem:[%s1772_s7 + $0x18] sm:$0xff]   ;;  %s1011_s27 = sshll.u32 %s1506_s18, 4  ;;  %s792_s29 = sshll.u32 %s1813_s3, 4  ;;  %s1856_s29 = int_to_ptr.vmem [resolvable:$true] %s792_s29 }
  0x8f   : > { %453 = vmatprep.subr.bf16.mxu0 %v1276_v5  ;;  %1144 = vmatprep.subr.bf16.mxu1 %v1276_v5  ;;  %v1301_v24 = vld [vmem:[%s1772_s7 + $0x38] sm:$0xff]   ;;  %v313_v27 = vsub.s32 0, %v312_v26  ;;  %v309_v28 = vld [vmem:[#allocation7] sm:$0x3]  ;;  %v317_v29 = vsub.s32 1, %v312_v26  ;;  %s789_s26 = sadd.s32 %s1011_s27, %s1009_s25  ;;  %s760_s12 = scalar_lea.sflag [#allocation10], %s1765_s13 }
  0x90   : > { %s1013_s10 = sshll.u32 %s789_s26, 6  ;;  %s1388_s23 = scalar_lea.vmem %s1856_s29, 1024 }
  0x91   : > { %v1798_v30 = vrot.slane %v309_v28, %v313_v27  ;;  %v1800_v32 = vrot.slane %v309_v28, %v317_v29  ;;  %s1861_s14 = scalar_lea.hbm %s1970_s4, %s1013_s10  ;;  %p1389_p2 = scmp.ne.s32.totalorder %s1856_s29, %s1388_s23 }
  0x92   : > { %454 = vmatpush1.bf16.msra.mxu0 %v1278_v6  ;;  %1152 = vmatpush1.bf16.msra.mxu1 %v1278_v6  ;;  %s1532_s24 = smov [#allocation9]  }
  0x93   : > { %455 = vmatprep.subr.bf16.mxu0 %v1279_v7  ;;  %1145 = vmatprep.subr.bf16.mxu1 %v1279_v7  ;;  %p1390_p10 = pnand %p1389_p2, %p1704_p6  ;;  %s1392_s5 = sshll.u32 %s1532_s24, 4  ;;  %s1393_s5 = int_to_ptr.vmem [resolvable:$false] %s1392_s5 }
  0x94   : > { %s1394_s28 = scalar_lea.vmem %s1393_s5, 2048  ;;  %p1395_p8 = scmp.lt.s32.totalorder %s1856_s29, %s1393_s5 }
  0x95   : > { %p1391_p4 = pneg %p1390_p10  ;;  %p1396_p13 = scmp.lt.s32.totalorder %s1394_s28, %s1388_s23 }
  0x96   : > { %456 = vmatpush1.bf16.msra.mxu0 %v1281_v8  ;;  %1153 = vmatpush1.bf16.msra.mxu1 %v1281_v8 }
  0x97   : > { %457 = vmatprep.subr.bf16.mxu0 %v1282_v9  ;;  %1146 = vmatprep.subr.bf16.mxu1 %v1282_v9  ;;  %p1397_p3 = por %p1396_p13, %p1395_p8 }
  0x99   : > { %p1398_p7 = pnand %p1397_p3, %p1391_p4 }
  0x9a   : > { %458 = vmatpush1.bf16.msra.mxu0 %v1284_v10  ;;  %1154 = vmatpush1.bf16.msra.mxu1 %v1284_v10 }
  0x9b   : > { %459 = vmatprep.subr.bf16.mxu0 %v1285_v11  ;;  %1147 = vmatprep.subr.bf16.mxu1 %v1285_v11 }
  0x9e   : > { %460 = vmatpush1.bf16.msra.mxu0 %v1287_v12  ;;  %1155 = vmatpush1.bf16.msra.mxu1 %v1287_v12 }
  0x9f   : > { %461 = vmatprep.subr.bf16.mxu0 %v1288_v13  ;;  %1148 = vmatprep.subr.bf16.mxu1 %v1288_v13 }
  0xa2   : > { %462 = vmatpush1.bf16.msra.mxu0 %v1290_v14  ;;  %1156 = vmatpush1.bf16.msra.mxu1 %v1290_v14 }
  0xa3   : > { %463 = vmatprep.subr.bf16.mxu0 %v1291_v15  ;;  %1149 = vmatprep.subr.bf16.mxu1 %v1291_v15 }
  0xa6   : > { %464 = vmatpush1.bf16.msra.mxu0 %v1293_v16  ;;  %1157 = vmatpush1.bf16.msra.mxu1 %v1293_v16 }
  0xa9   : > { %482 = vmatmul.mubr.bf16.vlgmr.msra.gmra.mrb[0].mxu0 %v1294_v17  ;;  %522 = vmatmul.mubr.bf16.vlgmr.msra.gmra.mrb[0].mxu1 %v1298_v18 }
  0xaa   : > { %491 = vmatprep.mubr.bf16.mxu0 %v1531_v0  ;;  %531 = vmatprep.mubr.bf16.mxu1 %v1531_v0 }
  0xb1   : > { %492 = vmatmul.mubr.bf16.gmra.mrb[4].mxu0 %v1295_v19  ;;  %532 = vmatmul.mubr.bf16.gmra.mrb[4].mxu1 %v1299_v20 }
  0xb2   : > { %501 = vmatprep.mubr.bf16.mxu0 %v1531_v0  ;;  %541 = vmatprep.mubr.bf16.mxu1 %v1531_v0 }
  0xb9   : > { %502 = vmatmul.mubr.bf16.gmra.mrb[8].mxu0 %v1296_v21  ;;  %542 = vmatmul.mubr.bf16.gmra.mrb[8].mxu1 %v1300_v22 }
  0xba   : > { %511 = vmatprep.mubr.bf16.mxu0 %v1531_v0  ;;  %551 = vmatprep.mubr.bf16.mxu1 %v1531_v0 }
  0xc1   : > { %512 = vmatmul.mubr.bf16.gmra.mrb[12].mxu0 %v1297_v23  ;;  %552 = vmatmul.mubr.bf16.gmra.mrb[12].mxu1 %v1301_v24 }
 0x17c   : > { %v483_v31 = vpop.f32.mrb[0].mxu0  ;;  %v1802_v33 = vpop.f32.mrb[0].mxu1 }
 0x17d   : > { %v485_v34 = vpop.f32.mrb[1].mxu0  ;;  %v484_v35 = vadd.f32 %v483_v31, %v1798_v30  ;;  %v525_v36 = vpop.f32.mrb[1].mxu1 }
 0x17e   : > { %v487_v37 = vpop.f32.mrb[2].mxu0  ;;  %v526_v38 = vadd.f32 %v525_v36, %v1800_v32  ;;  %v1806_v39 = vpop.f32.mrb[2].mxu1  ;;  %v486_v42 = vadd.f32 %v485_v34, %v1800_v32 }
 0x17f   : > { %v489_v40 = vpop.f32.mrb[3].mxu0  ;;  %562 = vxpose.xlu0.b32.start [1/16] %v484_v35, 128  ;;  %v529_v41 = vpop.f32.mrb[3].mxu1  ;;  %v488_v45 = vadd.f32 %v487_v37, %v1798_v30  ;;  %v524_v35 = vadd.f32 %v1802_v33, %v1798_v30  ;;  %v528_v36 = vadd.f32 %v1806_v39, %v1798_v30 }
 0x180   : > { %v490_v43 = vadd.f32 %v489_v40, %v1800_v32  ;;  %v530_v44 = vadd.f32 %v529_v41, %v1800_v32 }
 0x182   : > { %v1091_v46 = vpack.c.bf16 %v490_v43, %v486_v42  ;;  %v1111_v47 = vpack.c.bf16 %v530_v44, %v526_v38 }
 0x183   : > { %563 = vxpose.xlu0.b32.cont [2/16] %v488_v45, 128 }
 0x184   : > { %1092 = vst [vmem:[%s1813_s3] sm:$0xff] %v1091_v46   ;;  %v493_v48 = vpop.f32.mrb[4].mxu0  ;;  %1138 = vst [vmem:[%s1813_s3 + $0x20] sm:$0xff] %v1111_v47   ;;  %v533_v49 = vpop.f32.mrb[4].mxu1 }
 0x185   : > { %v494_v50 = vadd.f32 %v493_v48, %v1798_v30  ;;  %v495_v51 = vpop.f32.mrb[5].mxu0  ;;  %v535_v52 = vpop.f32.mrb[5].mxu1  ;;  %v534_v37 = vadd.f32 %v533_v49, %v1798_v30 }
 0x186   : > { %v497_v53 = vpop.f32.mrb[6].mxu0  ;;  %v536_v54 = vadd.f32 %v535_v52, %v1800_v32  ;;  %v537_v55 = vpop.f32.mrb[6].mxu1  ;;  %v496_v58 = vadd.f32 %v495_v51, %v1800_v32 }
 0x187   : > { %v499_v56 = vpop.f32.mrb[7].mxu0  ;;  %564 = vxpose.xlu0.b32.cont [3/16] %v494_v50, 128  ;;  %v539_v57 = vpop.f32.mrb[7].mxu1  ;;  %v498_v61 = vadd.f32 %v497_v53, %v1798_v30 }
 0x188   : > { %v500_v59 = vadd.f32 %v499_v56, %v1800_v32  ;;  %v540_v60 = vadd.f32 %v539_v57, %v1800_v32 }
 0x18a   : > { %v1096_v62 = vpack.c.bf16 %v500_v59, %v496_v58  ;;  %v1116_v63 = vpack.c.bf16 %v540_v60, %v536_v54 }
 0x18b   : > { %565 = vxpose.xlu0.b32.cont [4/16] %v498_v61, 128 }
 0x18c   : > { %1135 = vst [vmem:[%s1813_s3 + $0x8] sm:$0xff] %v1096_v62   ;;  %v503_v0 = vpop.f32.mrb[8].mxu0  ;;  %1139 = vst [vmem:[%s1813_s3 + $0x28] sm:$0xff] %v1116_v63   ;;  %v543_v1 = vpop.f32.mrb[8].mxu1 }
 0x18d   : > { %v504_v2 = vadd.f32 %v503_v0, %v1798_v30  ;;  %v505_v3 = vpop.f32.mrb[9].mxu0  ;;  %v545_v4 = vpop.f32.mrb[9].mxu1  ;;  %v544_v38 = vadd.f32 %v543_v1, %v1798_v30 }
 0x18e   : > { %v507_v5 = vpop.f32.mrb[10].mxu0  ;;  %v546_v6 = vadd.f32 %v545_v4, %v1800_v32  ;;  %v547_v7 = vpop.f32.mrb[10].mxu1  ;;  %v506_v10 = vadd.f32 %v505_v3, %v1800_v32 }
 0x18f   : > { %v509_v8 = vpop.f32.mrb[11].mxu0  ;;  %566 = vxpose.xlu0.b32.cont [5/16] %v504_v2, 128  ;;  %v549_v9 = vpop.f32.mrb[11].mxu1  ;;  %v508_v13 = vadd.f32 %v507_v5, %v1798_v30  ;;  %v548_v33 = vadd.f32 %v547_v7, %v1798_v30 }
 0x190   : > { %v510_v11 = vadd.f32 %v509_v8, %v1800_v32  ;;  %v550_v12 = vadd.f32 %v549_v9, %v1800_v32 }
 0x192   : > { %v1101_v14 = vpack.c.bf16 %v510_v11, %v506_v10  ;;  %v1121_v15 = vpack.c.bf16 %v550_v12, %v546_v6 }
 0x193   : > { %567 = vxpose.xlu0.b32.cont [6/16] %v508_v13, 128 }
 0x194   : > { %1136 = vst [vmem:[%s1813_s3 + $0x10] sm:$0xff] %v1101_v14   ;;  %v513_v16 = vpop.f32.mrb[12].mxu0  ;;  %1140 = vst [vmem:[%s1813_s3 + $0x30] sm:$0xff] %v1121_v15   ;;  %v553_v17 = vpop.f32.mrb[12].mxu1 }
 0x195   : > { %v514_v18 = vadd.f32 %v513_v16, %v1798_v30  ;;  %v515_v19 = vpop.f32.mrb[13].mxu0  ;;  %v555_v20 = vpop.f32.mrb[13].mxu1  ;;  %v554_v40 = vadd.f32 %v553_v17, %v1798_v30 }
 0x196   : > { %v517_v21 = vpop.f32.mrb[14].mxu0  ;;  %v556_v22 = vadd.f32 %v555_v20, %v1800_v32  ;;  %v557_v23 = vpop.f32.mrb[14].mxu1  ;;  %v516_v26 = vadd.f32 %v515_v19, %v1800_v32 }
 0x197   : > { %v519_v24 = vpop.f32.mrb[15].mxu0  ;;  %568 = vxpose.xlu0.b32.cont [7/16] %v514_v18, 128  ;;  %v559_v25 = vpop.f32.mrb[15].mxu1  ;;  %v518_v29 = vadd.f32 %v517_v21, %v1798_v30  ;;  %v558_v39 = vadd.f32 %v557_v23, %v1798_v30 }
 0x198   : > { %v520_v27 = vadd.f32 %v519_v24, %v1800_v32  ;;  %v560_v28 = vadd.f32 %v559_v25, %v1800_v32  ;;  %v538_v32 = vadd.f32 %v537_v55, %v1798_v30 }
 0x19a   : > { %v1106_v31 = vpack.c.bf16 %v520_v27, %v516_v26  ;;  %v1126_v34 = vpack.c.bf16 %v560_v28, %v556_v22 }
 0x19b   : > { %569 = vxpose.xlu0.b32.cont [8/16] %v518_v29, 128 }
 0x19c   : > { %1137 = vst [vmem:[%s1813_s3 + $0x18] sm:$0xff] %v1106_v31   ;;  %1141 = vst [vmem:[%s1813_s3 + $0x38] sm:$0xff] %v1126_v34  }
 0x19f   : > { %570 = vxpose.xlu0.b32.cont [9/16] %v524_v35, 128 }
 0x1a3   : > { %571 = vxpose.xlu0.b32.cont [10/16] %v528_v36, 128 }
 0x1a7   : > { %572 = vxpose.xlu0.b32.cont [11/16] %v534_v37, 128 }
 0x1ab   : > { %573 = vxpose.xlu0.b32.cont [12/16] %v538_v32, 128 }
 0x1af   : > { %574 = vxpose.xlu0.b32.cont [13/16] %v544_v38, 128 }
 0x1b3   : > { %575 = vxpose.xlu0.b32.cont [14/16] %v548_v33, 128 }
 0x1b7   : > { %576 = vxpose.xlu0.b32.cont [15/16] %v554_v40, 128 }
 0x1bb   : > { %577 = vxpose.xlu0.b32.end [16/16] %v558_v39, 128 }
 0x1bc   : > { %1401 = shalt.err (!%p1398_p7)
}
 0x1bd   : > { %s1402_s30 = scalar_lea.hbm %s1861_s14, 1024  ;;  %s1406_s3 = scalar_lea.hbm %s1970_s4, 4096 }
 0x1be   : > { %p1403_p12 = scmp.ne.s32.totalorder %s1861_s14, %s1402_s30  ;;  %p1407_p5 = scmp.lt.u32.totalorder %s1861_s14, %s1970_s4 }
 0x1bf   : > { %p1408_p9 = scmp.lt.u32.totalorder %s1406_s3, %s1402_s30  ;;  %p1410_p2 = scmp.lt.u32.totalorder %s1402_s30, %s1861_s14 }
 0x1c0   : > { %p1404_p11 = pnand %p1403_p12, %p1704_p6 }
 0x1c1   : > { %p1409_p0 = por %p1408_p9, %p1407_p5 }
 0x1c2   : > { %p1405_p1 = pneg %p1404_p11 }
 0x1c3   : > { %p1411_p10 = por %p1410_p2, %p1409_p0 }
 0x1c5   : > { %p1412_p4 = pnand %p1411_p10, %p1405_p1 }
 0x1c7   : > { %1415 = shalt.err (!%p1412_p4)
}
 0x1c8   : > { %s1533_s10 = smov 64   ;;  %s1534_s6 = smov 4  }
 0x1c9   : > { %1169 = dma.vmem_to_hbm [thread:$0]  (%p1704_p6), %s1856_s29, 1024, %s1861_s14, %s760_s12, %s1533_s10, %s1533_s10, %s1534_s6  }
 0x1ca   : > { %s1891_s11 = scalar_lea.vmem [#allocation8], %s1768_s2  ;;  %s771_s2 = sadd.s32 %s1506_s18, %s1009_s25 }
 0x1cb   : > { %s774_s29 = sshll.u32 %s1891_s11, 4  ;;  %s1010_s14 = sshll.u32 %s771_s2, 6  ;;  %s1904_s29 = int_to_ptr.vmem [resolvable:$true] %s774_s29 }
 0x1cc   : > { %s2000_s24 = sld [smem:[#allocation20_spill]]  ;;  %s755_s28 = scalar_lea.sflag [#allocation4], %s1765_s13 }
 0x1cd   : > { %s1416_s30 = scalar_lea.vmem %s1904_s29, 1024  ;;  %s1535_s18 = smov [#allocation8]  }
 0x1ce   : > { %p1417_p8 = scmp.ne.s32.totalorder %s1904_s29, %s1416_s30  ;;  %s1420_s19 = sshll.u32 %s1535_s18, 4  ;;  %s1421_s19 = int_to_ptr.vmem [resolvable:$false] %s1420_s19 }
 0x1cf   : > { %s1422_s25 = scalar_lea.vmem %s1421_s19, 2048  ;;  %p1423_p7 = scmp.lt.s32.totalorder %s1904_s29, %s1421_s19 }
 0x1d0   : > { %p1418_p13 = pnand %p1417_p8, %p1704_p6  ;;  %p1424_p12 = scmp.lt.s32.totalorder %s1422_s25, %s1416_s30 }
 0x1d2   : > { %s1909_s5 = scalar_lea.hbm %s2000_s24, %s1010_s14  ;;  %p1419_p3 = pneg %p1418_p13 }
 0x1d3   : > { %p1425_p11 = por %p1424_p12, %p1423_p7 }
 0x1d5   : > { %p1426_p1 = pnand %p1425_p11, %p1419_p3 }
 0x1ff   : > { %v578_v30 = vpop.trf.xlu0 }
 0x203   : > { %v579_v41 = vpop.trf.xlu0 }
 0x204   : > { %v1051_v42 = vpack.c.bf16 %v579_v41, %v578_v30 }
 0x206   : > { %1052 = vst [vmem:[%s1891_s11] sm:$0xff] %v1051_v42  }
 0x207   : > { %v580_v43 = vpop.trf.xlu0 }
 0x20b   : > { %v581_v44 = vpop.trf.xlu0 }
 0x20c   : > { %v1056_v45 = vpack.c.bf16 %v581_v44, %v580_v43 }
 0x20e   : > { %1128 = vst [vmem:[%s1891_s11 + $0x8] sm:$0xff] %v1056_v45  }
 0x20f   : > { %v582_v46 = vpop.trf.xlu0 }
 0x213   : > { %v583_v47 = vpop.trf.xlu0 }
 0x214   : > { %v1061_v48 = vpack.c.bf16 %v583_v47, %v582_v46 }
 0x216   : > { %1129 = vst [vmem:[%s1891_s11 + $0x10] sm:$0xff] %v1061_v48  }
 0x217   : > { %v584_v49 = vpop.trf.xlu0 }
 0x21b   : > { %v585_v50 = vpop.trf.xlu0 }
 0x21c   : > { %v1066_v51 = vpack.c.bf16 %v585_v50, %v584_v49 }
 0x21e   : > { %1130 = vst [vmem:[%s1891_s11 + $0x18] sm:$0xff] %v1066_v51  }
 0x21f   : > { %v586_v52 = vpop.trf.xlu0 }
 0x223   : > { %v587_v53 = vpop.trf.xlu0 }
 0x224   : > { %v1071_v54 = vpack.c.bf16 %v587_v53, %v586_v52 }
 0x226   : > { %1131 = vst [vmem:[%s1891_s11 + $0x20] sm:$0xff] %v1071_v54  }
 0x227   : > { %v588_v55 = vpop.trf.xlu0 }
 0x22b   : > { %v589_v56 = vpop.trf.xlu0 }
 0x22c   : > { %v1076_v57 = vpack.c.bf16 %v589_v56, %v588_v55 }
 0x22e   : > { %1132 = vst [vmem:[%s1891_s11 + $0x28] sm:$0xff] %v1076_v57  }
 0x22f   : > { %v590_v58 = vpop.trf.xlu0 }
 0x233   : > { %v591_v59 = vpop.trf.xlu0 }
 0x234   : > { %v1081_v60 = vpack.c.bf16 %v591_v59, %v590_v58 }
 0x236   : > { %1133 = vst [vmem:[%s1891_s11 + $0x30] sm:$0xff] %v1081_v60  }
 0x237   : > { %v592_v61 = vpop.trf.xlu0 }
 0x23b   : > { %v593_v62 = vpop.trf.xlu0 }
 0x23c   : > { %v1086_v63 = vpack.c.bf16 %v593_v62, %v592_v61 }
 0x23e   : > { %1134 = vst [vmem:[%s1891_s11 + $0x38] sm:$0xff] %v1086_v63  }
 0x23f   : > { %1429 = shalt.err (!%p1426_p1)
}
 0x240   : > { %s1430_s15 = scalar_lea.hbm %s1909_s5, 1024  ;;  %s1434_s27 = scalar_lea.hbm %s2000_s24, 4096 }
 0x241   : > { %p1431_p5 = scmp.ne.s32.totalorder %s1909_s5, %s1430_s15  ;;  %p1435_p2 = scmp.lt.u32.totalorder %s1909_s5, %s2000_s24 }
 0x242   : > { %p1436_p10 = scmp.lt.u32.totalorder %s1434_s27, %s1430_s15  ;;  %p1438_p8 = scmp.lt.u32.totalorder %s1430_s15, %s1909_s5 }
 0x243   : > { %p1432_p9 = pnand %p1431_p5, %p1704_p6 }
 0x244   : > { %p1437_p4 = por %p1436_p10, %p1435_p2 }
 0x245   : > { %p1433_p0 = pneg %p1432_p9 }
 0x246   : > { %p1439_p13 = por %p1438_p8, %p1437_p4 }
 0x248   : > { %p1440_p3 = pnand %p1439_p13, %p1433_p0 }
 0x24a   : > { %1443 = shalt.err (!%p1440_p3)
}
 0x24b   : > { %s1536_s2 = smov 128  }
 0x24c   : > { %1168 = dma.vmem_to_hbm [thread:$0]  (%p1704_p6), %s1904_s29, 1024, %s1909_s5, %s755_s28, %s1533_s10, %s1536_s2, %s1534_s6  }
 0x24d PF: > { %s2001_s14 = sld [smem:[#allocation15_spill]]  ;;  %s2002_s12 = sld [smem:[#allocation16_spill]] }
 0x24e   : > { %p1195_p7 = scmp.ge.s32.totalorder %s1522_s22, 2 }
 0x253   : > { %s807_s23 = sand.u32 1, %s2001_s14   ;;  %p2003_p12 = scmp.ne.s32.totalorder %s2002_s12, 0 }
 0x254   : > { %s808_s30 = scalar_lea.sflag [#allocation4], %s807_s23 }
 0x255   : > { %p1184_p11 = pnand %p1195_p7, %p2003_p12 }
 0x257   : > { %1485 = dma.done.wait (!%p1184_p11), %s808_s30, 1024  }
 0x258   : > { %1487 = vsyncadd (!%p1184_p11), %s808_s30, 4294966272  ;;  %s817_s18 = scalar_lea.sflag [#allocation10], %s807_s23 }
 0x259   : > { %1489 = dma.done.wait (!%p1184_p11), %s817_s18, 1024  }
 0x25a   : > { %1491 = vsyncadd (!%p1184_p11), %s817_s18, 4294966272  ;;  %s25_s22 = sadd.s32 1, %s1522_s22   ;;  %s2004_s8 = sld [smem:[#allocation17_spill]] }
 0x25b   : > { %p22_p1 = scmp.ge.s32.totalorder %s25_s22, 6   ;;  %s2005_s15 = smov %s1498_s16 }
 0x25c   : > { %s2006_s16 = smov %s1502_s17  ;;  %s2007_s17 = smov %s1717_s1 }
 0x25d   : > { %s2008_s18 = smov %s1514_s20  ;;  %s2009_s19 = smov %s1518_s21 }
 0x25e   : > { %s2011_s21 = smov %s2017_s9  ;;  %24 = sbr.rel (!%p22_p1) target bundleno = 14 (0xe), region = 102 }
 0x260   : > { %s2010_s20 = smov %s2004_s8 }
 0x265   :  { %822 = vsyncpa [#allocation3], 1 }
 0x266   :  { %824 = vsyncpa [#allocation3 + $0x1], 1 }
 0x267   :  { %825 = vsyncpa [#allocation6], 1 }
 0x268   :  { %826 = vsyncpa [#allocation4], 1 }
 0x269   :  { %828 = vsyncpa [#allocation4 + $0x1], 1 }
 0x26a   :  { %829 = vsyncpa [#allocation10], 1 }
 0x26b   :  { %831 = vsyncpa [#allocation10 + $0x1], 1 }

</bundles_post_ra>
